<compile_context>
chip_gen: v7x
topology: tpu7x:2x2x1
jax: 0.10.0
libtpu: 0.0.40
codegen_flags: <defaults>
</compile_context>

<pallas_src>
import jax
import jax.numpy as jnp
from jax.experimental import pallas as pl
from jax.experimental.pallas import tpu as pltpu


def lstm_kernel(x_ref, wih_ref, whh_ref, b_ref, wfc_ref, bfc_ref, out_ref):
    T, B, D = x_ref.shape            # x is TIME-MAJOR: (T, B, D)
    H = whh_ref.shape[0]

    # ---- Hoisted weight loads: one vld each, reused across all T steps ----
    w_ih = wih_ref[...]
    w_hh = whh_ref[...]
    bias = b_ref[...]
    w_fc = wfc_ref[...]
    b_fc = bfc_ref[...]

    def sigmoid_fast(v):
        # 1 / (1 + exp(-v)) with the approximate EUP reciprocal: one exp +
        # one vrcp per call, both on the EUP slot (shorter chain than the
        # default lax.logistic lowering).
        return pl.reciprocal(1.0 + jnp.exp(-v), approx=True)

    # ---- Prologue: hoisted, time-independent input projection -------------
    # One (T*B, D) x (D, 4H) MXU matmul + bias.  Row t*B + b of x_all is
    # x[t, b, :], so each timestep's gate block is a contiguous aligned slice.
    x_all = x_ref[...].reshape(T * B, D)
    gx = jnp.dot(x_all, w_ih, preferred_element_type=jnp.float32) + bias

    # ---- Recurrence over time ----------------------------------------------
    # T is a small Python int -> fully unrolled at trace time (full LLO
    # visibility across steps, static aligned slices).
    # TODO(synk): at larger T, switch to lax.fori_loop(..., unroll=4..8) with
    # gx staged in a VMEM scratch to bound vreg live ranges / compile time,
    # and re-tile gx over T for v7x's 64 MiB VMEM.
    # TODO(synk): stage W_hh on the MXU across steps via
    # pltpu.matmul_push_rhs / matmul_acc_lhs / matmul_pop once shapes justify
    # driving the MXU explicitly (per-step RHS here is only (32, 128)).
    h = jnp.zeros((B, H), jnp.float32)
    c = jnp.zeros((B, H), jnp.float32)
    for t in range(T):
        g_t = gx[t * B:(t + 1) * B, :]                  # aligned (B, 4H) slice
        gates = g_t + jnp.dot(h, w_hh, preferred_element_type=jnp.float32)

        # Full-vreg activations on packed (i, f, g, o): one exp+recip and one
        # tanh EUP launch per step.
        sg = sigmoid_fast(gates)
        tg = jnp.tanh(gates)

        # Align the (B, H) gate blocks onto lanes 0..H-1 (where c/h live)
        # using XLU rolls instead of VPU lane-selects on the serial chain.
        # jnp.roll semantics: out[l] = x[(l - shift) mod 4H].
        i_g = sg[:, :H]
        f_g = pltpu.roll(sg, shift=3 * H, axis=1)[:, :H]   # lanes  H..2H-1 -> 0..H-1
        g_g = pltpu.roll(tg, shift=2 * H, axis=1)[:, :H]   # lanes 2H..3H-1 -> 0..H-1
        o_g = pltpu.roll(sg, shift=1 * H, axis=1)[:, :H]   # lanes 3H..4H-1 -> 0..H-1

        c = f_g * c + i_g * g_g
        h = o_g * jnp.tanh(c)

    # ---- Epilogue: fused fc + sigmoid on h_T; lane-dense (padded) store ----
    logits = jnp.dot(h, w_fc, preferred_element_type=jnp.float32) + b_fc
    out_ref[...] = sigmoid_fast(logits)


def lstm_forward(x, w_ih, w_hh, b, w_fc, b_fc):
    """x: (B, T, D) batch-first. Returns sigmoid(fc(h_T)).squeeze() -> (B,)."""
    B, T, D = x.shape
    H = w_hh.shape[0]
    out_dim = w_fc.shape[1]

    # Time-major layout for the kernel: per-step gate block becomes one
    # contiguous (8, 128) vreg-aligned slice (tiny one-time XLA transpose).
    x_tm = jnp.transpose(x, (1, 0, 2))

    # Pad the fc weights to a lane-dense 128-wide output so the kernel's
    # final store is an unmasked full-vreg vst; sliced back below.
    out_pad = max(128, pl.cdiv(out_dim, 128) * 128)
    w_fc_p = jnp.zeros((H, out_pad), w_fc.dtype).at[:, :out_dim].set(w_fc)
    b_fc_p = jnp.zeros((1, out_pad), b_fc.dtype).at[:, :out_dim].set(b_fc)

    vmem = pl.BlockSpec(memory_space=pltpu.MemorySpace.VMEM)
    out = pl.pallas_call(
        lstm_kernel,
        out_shape=jax.ShapeDtypeStruct((B, out_pad), jnp.float32),
        in_specs=[vmem] * 6,          # everything fully VMEM-resident (~50 KB)
        out_specs=vmem,
    )(x_tm, w_ih, w_hh, b, w_fc_p, b_fc_p)

    # TODO(synk): at scaled shapes, cast the matmul operands (gx inputs, W_ih,
    # W_hh) to bfloat16 with f32 accumulation — valid on v5e too (its MXU
    # supports bf16; only its VPU/EUP lack bf16).  Kept f32 here because the
    # toy shapes are latency-bound, not MXU/VMEM-bound.
    # TODO(synk): at realistic batch sizes add a parallel batch grid axis
    # (dimension_semantics=("parallel",)) / core_map to engage v7x's second
    # TensorCore; at B=8 a half-batch output block would violate the (8, 128)
    # tiling constraint, so it is skipped here.
    return jnp.squeeze(out[:, :out_dim])


def reference_forward(x, w_ih, w_hh, b, w_fc, b_fc):
    """Pure-JAX reference (exact sigmoid) for the correctness check."""
    B, T, D = x.shape
    H = w_hh.shape[0]
    h = jnp.zeros((B, H), jnp.float32)
    c = jnp.zeros((B, H), jnp.float32)
    for t in range(T):
        gates = x[:, t, :] @ w_ih + h @ w_hh + b
        i = jax.nn.sigmoid(gates[:, 0 * H:1 * H])
        f = jax.nn.sigmoid(gates[:, 1 * H:2 * H])
        g = jnp.tanh(gates[:, 2 * H:3 * H])
        o = jax.nn.sigmoid(gates[:, 3 * H:4 * H])
        c = f * c + i * g
        h = o * jnp.tanh(c)
    return jnp.squeeze(jax.nn.sigmoid(h @ w_fc + b_fc))


if __name__ == "__main__":
    B, T, D, H = 8, 8, 16, 32
    OUT_DIM = 1  # placeholder 'the number of layers' in the original source

    key = jax.random.PRNGKey(0)
    kx, k1, k2, k3, k4, k5 = jax.random.split(key, 6)
    scale = 1.0 / jnp.sqrt(H)

    x = jax.random.normal(kx, (B, T, D), jnp.float32)
    # Weights in right-multiply form; gate order (i, f, g, o), PyTorch-style.
    w_ih = jax.random.uniform(k1, (D, 4 * H), jnp.float32, -scale, scale)
    w_hh = jax.random.uniform(k2, (H, 4 * H), jnp.float32, -scale, scale)
    b = jax.random.uniform(k3, (1, 4 * H), jnp.float32, -scale, scale)  # b_ih + b_hh
    w_fc = jax.random.uniform(k4, (H, OUT_DIM), jnp.float32, -scale, scale)
    b_fc = jax.random.uniform(k5, (1, OUT_DIM), jnp.float32, -scale, scale)

    out = lstm_forward(x, w_ih, w_hh, b, w_fc, b_fc)
    jax.block_until_ready(out)

    ref = reference_forward(x, w_ih, w_hh, b, w_fc, b_fc)
    assert out.shape == (B,), out.shape
    # Tolerance accommodates the approximate EUP reciprocal used inside the
    # kernel's sigmoid (reference uses the exact lowering); observed error is
    # far below this bound.
    assert jnp.allclose(out, ref, atol=2e-3, rtol=2e-3), (out, ref)

    print("KERNEL_OK")
</pallas_src>

<mosaic_0001>
module attributes {stable_mosaic.version = 11 : i64} {
  func.func @lstm_kernel(%arg0: memref<8x8x16xf32, #tpu.memory_space<vmem>>, %arg1: memref<16x128xf32, #tpu.memory_space<vmem>>, %arg2: memref<32x128xf32, #tpu.memory_space<vmem>>, %arg3: memref<1x128xf32, #tpu.memory_space<vmem>>, %arg4: memref<32x128xf32, #tpu.memory_space<vmem>>, %arg5: memref<1x128xf32, #tpu.memory_space<vmem>>, %arg6: memref<8x128xf32, #tpu.memory_space<vmem>>) attributes {dimension_semantics = [], scalar_prefetch = 0 : i64, scratch_operands = 0 : i64, tpu.core_type = #tpu.core_type<tc>} {
    %c0 = arith.constant 0 : index
    %c0_0 = arith.constant 0 : index
    %0 = vector.load %arg1[%c0, %c0_0] : memref<16x128xf32, #tpu.memory_space<vmem>>, vector<16x128xf32>
    %c0_1 = arith.constant 0 : index
    %c0_2 = arith.constant 0 : index
    %1 = vector.load %arg2[%c0_1, %c0_2] : memref<32x128xf32, #tpu.memory_space<vmem>>, vector<32x128xf32>
    %c0_3 = arith.constant 0 : index
    %c0_4 = arith.constant 0 : index
    %2 = vector.load %arg3[%c0_3, %c0_4] : memref<1x128xf32, #tpu.memory_space<vmem>>, vector<1x128xf32>
    %c0_5 = arith.constant 0 : index
    %c0_6 = arith.constant 0 : index
    %3 = vector.load %arg4[%c0_5, %c0_6] : memref<32x128xf32, #tpu.memory_space<vmem>>, vector<32x128xf32>
    %c0_7 = arith.constant 0 : index
    %c0_8 = arith.constant 0 : index
    %4 = vector.load %arg5[%c0_7, %c0_8] : memref<1x128xf32, #tpu.memory_space<vmem>>, vector<1x128xf32>
    %c0_9 = arith.constant 0 : index
    %c0_10 = arith.constant 0 : index
    %c0_11 = arith.constant 0 : index
    %5 = vector.load %arg0[%c0_9, %c0_10, %c0_11] : memref<8x8x16xf32, #tpu.memory_space<vmem>>, vector<8x8x16xf32>
    %6 = vector.shape_cast %5 : vector<8x8x16xf32> to vector<64x16xf32>
    %cst = arith.constant dense<0.000000e+00> : vector<64x128xf32>
    %7 = tpu.matmul %6, %0, %cst {dimension_numbers = #tpu.dot_dimension_numbers<[1], [0], [0], [1], [0, 0, 1, 1], [], []>} : vector<64x16xf32>, vector<16x128xf32>, vector<64x128xf32> -> vector<64x128xf32>
    %8 = vector.broadcast %2 : vector<1x128xf32> to vector<64x128xf32>
    %9 = arith.addf %7, %8 : vector<64x128xf32>
    %cst_12 = arith.constant 0.000000e+00 : f32
    %10 = vector.broadcast %cst_12 : f32 to vector<8x32xf32>
    %cst_13 = arith.constant 0.000000e+00 : f32
    %11 = vector.broadcast %cst_13 : f32 to vector<8x32xf32>
    %12 = vector.extract_strided_slice %9 {offsets = [0, 0], sizes = [8, 128], strides = [1, 1]} : vector<64x128xf32> to vector<8x128xf32>
    %cst_14 = arith.constant dense<0.000000e+00> : vector<8x128xf32>
    %13 = tpu.matmul %10, %1, %cst_14 {dimension_numbers = #tpu.dot_dimension_numbers<[1], [0], [0], [1], [0, 0, 1, 1], [], []>} : vector<8x32xf32>, vector<32x128xf32>, vector<8x128xf32> -> vector<8x128xf32>
    %14 = arith.addf %12, %13 : vector<8x128xf32>
    %cst_15 = arith.constant 0.000000e+00 : f32
    %15 = vector.broadcast %cst_15 : f32 to vector<8x128xf32>
    %16 = arith.subf %15, %14 : vector<8x128xf32>
    %17 = math.exp %16 : vector<8x128xf32>
    %cst_16 = arith.constant 1.000000e+00 : f32
    %18 = vector.broadcast %cst_16 : f32 to vector<8x128xf32>
    %19 = arith.addf %18, %17 : vector<8x128xf32>
    %20 = tpu.reciprocal %19 {approx = true} : vector<8x128xf32> -> vector<8x128xf32>
    %21 = math.tanh %14 : vector<8x128xf32>
    %22 = vector.extract_strided_slice %20 {offsets = [0, 0], sizes = [8, 32], strides = [1, 1]} : vector<8x128xf32> to vector<8x32xf32>
    %c96_i32 = arith.constant 96 : i32
    %23 = tpu.dynamic_rotate %20 by %c96_i32 dim 1 : vector<8x128xf32>, i32 -> vector<8x128xf32>
    %24 = vector.extract_strided_slice %23 {offsets = [0, 0], sizes = [8, 32], strides = [1, 1]} : vector<8x128xf32> to vector<8x32xf32>
    %c64_i32 = arith.constant 64 : i32
    %25 = tpu.dynamic_rotate %21 by %c64_i32 dim 1 : vector<8x128xf32>, i32 -> vector<8x128xf32>
    %26 = vector.extract_strided_slice %25 {offsets = [0, 0], sizes = [8, 32], strides = [1, 1]} : vector<8x128xf32> to vector<8x32xf32>
    %c32_i32 = arith.constant 32 : i32
    %27 = tpu.dynamic_rotate %20 by %c32_i32 dim 1 : vector<8x128xf32>, i32 -> vector<8x128xf32>
    %28 = vector.extract_strided_slice %27 {offsets = [0, 0], sizes = [8, 32], strides = [1, 1]} : vector<8x128xf32> to vector<8x32xf32>
    %29 = arith.mulf %24, %11 : vector<8x32xf32>
    %30 = arith.mulf %22, %26 : vector<8x32xf32>
    %31 = arith.addf %29, %30 : vector<8x32xf32>
    %32 = math.tanh %31 : vector<8x32xf32>
    %33 = arith.mulf %28, %32 : vector<8x32xf32>
    %34 = vector.extract_strided_slice %9 {offsets = [8, 0], sizes = [8, 128], strides = [1, 1]} : vector<64x128xf32> to vector<8x128xf32>
    %cst_17 = arith.constant dense<0.000000e+00> : vector<8x128xf32>
    %35 = tpu.matmul %33, %1, %cst_17 {dimension_numbers = #tpu.dot_dimension_numbers<[1], [0], [0], [1], [0, 0, 1, 1], [], []>} : vector<8x32xf32>, vector<32x128xf32>, vector<8x128xf32> -> vector<8x128xf32>
    %36 = arith.addf %34, %35 : vector<8x128xf32>
    %cst_18 = arith.constant 0.000000e+00 : f32
    %37 = vector.broadcast %cst_18 : f32 to vector<8x128xf32>
    %38 = arith.subf %37, %36 : vector<8x128xf32>
    %39 = math.exp %38 : vector<8x128xf32>
    %cst_19 = arith.constant 1.000000e+00 : f32
    %40 = vector.broadcast %cst_19 : f32 to vector<8x128xf32>
    %41 = arith.addf %40, %39 : vector<8x128xf32>
    %42 = tpu.reciprocal %41 {approx = true} : vector<8x128xf32> -> vector<8x128xf32>
    %43 = math.tanh %36 : vector<8x128xf32>
    %44 = vector.extract_strided_slice %42 {offsets = [0, 0], sizes = [8, 32], strides = [1, 1]} : vector<8x128xf32> to vector<8x32xf32>
    %c96_i32_20 = arith.constant 96 : i32
    %45 = tpu.dynamic_rotate %42 by %c96_i32_20 dim 1 : vector<8x128xf32>, i32 -> vector<8x128xf32>
    %46 = vector.extract_strided_slice %45 {offsets = [0, 0], sizes = [8, 32], strides = [1, 1]} : vector<8x128xf32> to vector<8x32xf32>
    %c64_i32_21 = arith.constant 64 : i32
    %47 = tpu.dynamic_rotate %43 by %c64_i32_21 dim 1 : vector<8x128xf32>, i32 -> vector<8x128xf32>
    %48 = vector.extract_strided_slice %47 {offsets = [0, 0], sizes = [8, 32], strides = [1, 1]} : vector<8x128xf32> to vector<8x32xf32>
    %c32_i32_22 = arith.constant 32 : i32
    %49 = tpu.dynamic_rotate %42 by %c32_i32_22 dim 1 : vector<8x128xf32>, i32 -> vector<8x128xf32>
    %50 = vector.extract_strided_slice %49 {offsets = [0, 0], sizes = [8, 32], strides = [1, 1]} : vector<8x128xf32> to vector<8x32xf32>
    %51 = arith.mulf %46, %31 : vector<8x32xf32>
    %52 = arith.mulf %44, %48 : vector<8x32xf32>
    %53 = arith.addf %51, %52 : vector<8x32xf32>
    %54 = math.tanh %53 : vector<8x32xf32>
    %55 = arith.mulf %50, %54 : vector<8x32xf32>
    %56 = vector.extract_strided_slice %9 {offsets = [16, 0], sizes = [8, 128], strides = [1, 1]} : vector<64x128xf32> to vector<8x128xf32>
    %cst_23 = arith.constant dense<0.000000e+00> : vector<8x128xf32>
    %57 = tpu.matmul %55, %1, %cst_23 {dimension_numbers = #tpu.dot_dimension_numbers<[1], [0], [0], [1], [0, 0, 1, 1], [], []>} : vector<8x32xf32>, vector<32x128xf32>, vector<8x128xf32> -> vector<8x128xf32>
    %58 = arith.addf %56, %57 : vector<8x128xf32>
    %cst_24 = arith.constant 0.000000e+00 : f32
    %59 = vector.broadcast %cst_24 : f32 to vector<8x128xf32>
    %60 = arith.subf %59, %58 : vector<8x128xf32>
    %61 = math.exp %60 : vector<8x128xf32>
    %cst_25 = arith.constant 1.000000e+00 : f32
    %62 = vector.broadcast %cst_25 : f32 to vector<8x128xf32>
    %63 = arith.addf %62, %61 : vector<8x128xf32>
    %64 = tpu.reciprocal %63 {approx = true} : vector<8x128xf32> -> vector<8x128xf32>
    %65 = math.tanh %58 : vector<8x128xf32>
    %66 = vector.extract_strided_slice %64 {offsets = [0, 0], sizes = [8, 32], strides = [1, 1]} : vector<8x128xf32> to vector<8x32xf32>
    %c96_i32_26 = arith.constant 96 : i32
    %67 = tpu.dynamic_rotate %64 by %c96_i32_26 dim 1 : vector<8x128xf32>, i32 -> vector<8x128xf32>
    %68 = vector.extract_strided_slice %67 {offsets = [0, 0], sizes = [8, 32], strides = [1, 1]} : vector<8x128xf32> to vector<8x32xf32>
    %c64_i32_27 = arith.constant 64 : i32
    %69 = tpu.dynamic_rotate %65 by %c64_i32_27 dim 1 : vector<8x128xf32>, i32 -> vector<8x128xf32>
    %70 = vector.extract_strided_slice %69 {offsets = [0, 0], sizes = [8, 32], strides = [1, 1]} : vector<8x128xf32> to vector<8x32xf32>
    %c32_i32_28 = arith.constant 32 : i32
    %71 = tpu.dynamic_rotate %64 by %c32_i32_28 dim 1 : vector<8x128xf32>, i32 -> vector<8x128xf32>
    %72 = vector.extract_strided_slice %71 {offsets = [0, 0], sizes = [8, 32], strides = [1, 1]} : vector<8x128xf32> to vector<8x32xf32>
    %73 = arith.mulf %68, %53 : vector<8x32xf32>
    %74 = arith.mulf %66, %70 : vector<8x32xf32>
    %75 = arith.addf %73, %74 : vector<8x32xf32>
    %76 = math.tanh %75 : vector<8x32xf32>
    %77 = arith.mulf %72, %76 : vector<8x32xf32>
    %78 = vector.extract_strided_slice %9 {offsets = [24, 0], sizes = [8, 128], strides = [1, 1]} : vector<64x128xf32> to vector<8x128xf32>
    %cst_29 = arith.constant dense<0.000000e+00> : vector<8x128xf32>
    %79 = tpu.matmul %77, %1, %cst_29 {dimension_numbers = #tpu.dot_dimension_numbers<[1], [0], [0], [1], [0, 0, 1, 1], [], []>} : vector<8x32xf32>, vector<32x128xf32>, vector<8x128xf32> -> vector<8x128xf32>
    %80 = arith.addf %78, %79 : vector<8x128xf32>
    %cst_30 = arith.constant 0.000000e+00 : f32
    %81 = vector.broadcast %cst_30 : f32 to vector<8x128xf32>
    %82 = arith.subf %81, %80 : vector<8x128xf32>
    %83 = math.exp %82 : vector<8x128xf32>
    %cst_31 = arith.constant 1.000000e+00 : f32
    %84 = vector.broadcast %cst_31 : f32 to vector<8x128xf32>
    %85 = arith.addf %84, %83 : vector<8x128xf32>
    %86 = tpu.reciprocal %85 {approx = true} : vector<8x128xf32> -> vector<8x128xf32>
    %87 = math.tanh %80 : vector<8x128xf32>
    %88 = vector.extract_strided_slice %86 {offsets = [0, 0], sizes = [8, 32], strides = [1, 1]} : vector<8x128xf32> to vector<8x32xf32>
    %c96_i32_32 = arith.constant 96 : i32
    %89 = tpu.dynamic_rotate %86 by %c96_i32_32 dim 1 : vector<8x128xf32>, i32 -> vector<8x128xf32>
    %90 = vector.extract_strided_slice %89 {offsets = [0, 0], sizes = [8, 32], strides = [1, 1]} : vector<8x128xf32> to vector<8x32xf32>
    %c64_i32_33 = arith.constant 64 : i32
    %91 = tpu.dynamic_rotate %87 by %c64_i32_33 dim 1 : vector<8x128xf32>, i32 -> vector<8x128xf32>
    %92 = vector.extract_strided_slice %91 {offsets = [0, 0], sizes = [8, 32], strides = [1, 1]} : vector<8x128xf32> to vector<8x32xf32>
    %c32_i32_34 = arith.constant 32 : i32
    %93 = tpu.dynamic_rotate %86 by %c32_i32_34 dim 1 : vector<8x128xf32>, i32 -> vector<8x128xf32>
    %94 = vector.extract_strided_slice %93 {offsets = [0, 0], sizes = [8, 32], strides = [1, 1]} : vector<8x128xf32> to vector<8x32xf32>
    %95 = arith.mulf %90, %75 : vector<8x32xf32>
    %96 = arith.mulf %88, %92 : vector<8x32xf32>
    %97 = arith.addf %95, %96 : vector<8x32xf32>
    %98 = math.tanh %97 : vector<8x32xf32>
    %99 = arith.mulf %94, %98 : vector<8x32xf32>
    %100 = vector.extract_strided_slice %9 {offsets = [32, 0], sizes = [8, 128], strides = [1, 1]} : vector<64x128xf32> to vector<8x128xf32>
    %cst_35 = arith.constant dense<0.000000e+00> : vector<8x128xf32>
    %101 = tpu.matmul %99, %1, %cst_35 {dimension_numbers = #tpu.dot_dimension_numbers<[1], [0], [0], [1], [0, 0, 1, 1], [], []>} : vector<8x32xf32>, vector<32x128xf32>, vector<8x128xf32> -> vector<8x128xf32>
    %102 = arith.addf %100, %101 : vector<8x128xf32>
    %cst_36 = arith.constant 0.000000e+00 : f32
    %103 = vector.broadcast %cst_36 : f32 to vector<8x128xf32>
    %104 = arith.subf %103, %102 : vector<8x128xf32>
    %105 = math.exp %104 : vector<8x128xf32>
    %cst_37 = arith.constant 1.000000e+00 : f32
    %106 = vector.broadcast %cst_37 : f32 to vector<8x128xf32>
    %107 = arith.addf %106, %105 : vector<8x128xf32>
    %108 = tpu.reciprocal %107 {approx = true} : vector<8x128xf32> -> vector<8x128xf32>
    %109 = math.tanh %102 : vector<8x128xf32>
    %110 = vector.extract_strided_slice %108 {offsets = [0, 0], sizes = [8, 32], strides = [1, 1]} : vector<8x128xf32> to vector<8x32xf32>
    %c96_i32_38 = arith.constant 96 : i32
    %111 = tpu.dynamic_rotate %108 by %c96_i32_38 dim 1 : vector<8x128xf32>, i32 -> vector<8x128xf32>
    %112 = vector.extract_strided_slice %111 {offsets = [0, 0], sizes = [8, 32], strides = [1, 1]} : vector<8x128xf32> to vector<8x32xf32>
    %c64_i32_39 = arith.constant 64 : i32
    %113 = tpu.dynamic_rotate %109 by %c64_i32_39 dim 1 : vector<8x128xf32>, i32 -> vector<8x128xf32>
    %114 = vector.extract_strided_slice %113 {offsets = [0, 0], sizes = [8, 32], strides = [1, 1]} : vector<8x128xf32> to vector<8x32xf32>
    %c32_i32_40 = arith.constant 32 : i32
    %115 = tpu.dynamic_rotate %108 by %c32_i32_40 dim 1 : vector<8x128xf32>, i32 -> vector<8x128xf32>
    %116 = vector.extract_strided_slice %115 {offsets = [0, 0], sizes = [8, 32], strides = [1, 1]} : vector<8x128xf32> to vector<8x32xf32>
    %117 = arith.mulf %112, %97 : vector<8x32xf32>
    %118 = arith.mulf %110, %114 : vector<8x32xf32>
    %119 = arith.addf %117, %118 : vector<8x32xf32>
    %120 = math.tanh %119 : vector<8x32xf32>
    %121 = arith.mulf %116, %120 : vector<8x32xf32>
    %122 = vector.extract_strided_slice %9 {offsets = [40, 0], sizes = [8, 128], strides = [1, 1]} : vector<64x128xf32> to vector<8x128xf32>
    %cst_41 = arith.constant dense<0.000000e+00> : vector<8x128xf32>
    %123 = tpu.matmul %121, %1, %cst_41 {dimension_numbers = #tpu.dot_dimension_numbers<[1], [0], [0], [1], [0, 0, 1, 1], [], []>} : vector<8x32xf32>, vector<32x128xf32>, vector<8x128xf32> -> vector<8x128xf32>
    %124 = arith.addf %122, %123 : vector<8x128xf32>
    %cst_42 = arith.constant 0.000000e+00 : f32
    %125 = vector.broadcast %cst_42 : f32 to vector<8x128xf32>
    %126 = arith.subf %125, %124 : vector<8x128xf32>
    %127 = math.exp %126 : vector<8x128xf32>
    %cst_43 = arith.constant 1.000000e+00 : f32
    %128 = vector.broadcast %cst_43 : f32 to vector<8x128xf32>
    %129 = arith.addf %128, %127 : vector<8x128xf32>
    %130 = tpu.reciprocal %129 {approx = true} : vector<8x128xf32> -> vector<8x128xf32>
    %131 = math.tanh %124 : vector<8x128xf32>
    %132 = vector.extract_strided_slice %130 {offsets = [0, 0], sizes = [8, 32], strides = [1, 1]} : vector<8x128xf32> to vector<8x32xf32>
    %c96_i32_44 = arith.constant 96 : i32
    %133 = tpu.dynamic_rotate %130 by %c96_i32_44 dim 1 : vector<8x128xf32>, i32 -> vector<8x128xf32>
    %134 = vector.extract_strided_slice %133 {offsets = [0, 0], sizes = [8, 32], strides = [1, 1]} : vector<8x128xf32> to vector<8x32xf32>
    %c64_i32_45 = arith.constant 64 : i32
    %135 = tpu.dynamic_rotate %131 by %c64_i32_45 dim 1 : vector<8x128xf32>, i32 -> vector<8x128xf32>
    %136 = vector.extract_strided_slice %135 {offsets = [0, 0], sizes = [8, 32], strides = [1, 1]} : vector<8x128xf32> to vector<8x32xf32>
    %c32_i32_46 = arith.constant 32 : i32
    %137 = tpu.dynamic_rotate %130 by %c32_i32_46 dim 1 : vector<8x128xf32>, i32 -> vector<8x128xf32>
    %138 = vector.extract_strided_slice %137 {offsets = [0, 0], sizes = [8, 32], strides = [1, 1]} : vector<8x128xf32> to vector<8x32xf32>
    %139 = arith.mulf %134, %119 : vector<8x32xf32>
    %140 = arith.mulf %132, %136 : vector<8x32xf32>
    %141 = arith.addf %139, %140 : vector<8x32xf32>
    %142 = math.tanh %141 : vector<8x32xf32>
    %143 = arith.mulf %138, %142 : vector<8x32xf32>
    %144 = vector.extract_strided_slice %9 {offsets = [48, 0], sizes = [8, 128], strides = [1, 1]} : vector<64x128xf32> to vector<8x128xf32>
    %cst_47 = arith.constant dense<0.000000e+00> : vector<8x128xf32>
    %145 = tpu.matmul %143, %1, %cst_47 {dimension_numbers = #tpu.dot_dimension_numbers<[1], [0], [0], [1], [0, 0, 1, 1], [], []>} : vector<8x32xf32>, vector<32x128xf32>, vector<8x128xf32> -> vector<8x128xf32>
    %146 = arith.addf %144, %145 : vector<8x128xf32>
    %cst_48 = arith.constant 0.000000e+00 : f32
    %147 = vector.broadcast %cst_48 : f32 to vector<8x128xf32>
    %148 = arith.subf %147, %146 : vector<8x128xf32>
    %149 = math.exp %148 : vector<8x128xf32>
    %cst_49 = arith.constant 1.000000e+00 : f32
    %150 = vector.broadcast %cst_49 : f32 to vector<8x128xf32>
    %151 = arith.addf %150, %149 : vector<8x128xf32>
    %152 = tpu.reciprocal %151 {approx = true} : vector<8x128xf32> -> vector<8x128xf32>
    %153 = math.tanh %146 : vector<8x128xf32>
    %154 = vector.extract_strided_slice %152 {offsets = [0, 0], sizes = [8, 32], strides = [1, 1]} : vector<8x128xf32> to vector<8x32xf32>
    %c96_i32_50 = arith.constant 96 : i32
    %155 = tpu.dynamic_rotate %152 by %c96_i32_50 dim 1 : vector<8x128xf32>, i32 -> vector<8x128xf32>
    %156 = vector.extract_strided_slice %155 {offsets = [0, 0], sizes = [8, 32], strides = [1, 1]} : vector<8x128xf32> to vector<8x32xf32>
    %c64_i32_51 = arith.constant 64 : i32
    %157 = tpu.dynamic_rotate %153 by %c64_i32_51 dim 1 : vector<8x128xf32>, i32 -> vector<8x128xf32>
    %158 = vector.extract_strided_slice %157 {offsets = [0, 0], sizes = [8, 32], strides = [1, 1]} : vector<8x128xf32> to vector<8x32xf32>
    %c32_i32_52 = arith.constant 32 : i32
    %159 = tpu.dynamic_rotate %152 by %c32_i32_52 dim 1 : vector<8x128xf32>, i32 -> vector<8x128xf32>
    %160 = vector.extract_strided_slice %159 {offsets = [0, 0], sizes = [8, 32], strides = [1, 1]} : vector<8x128xf32> to vector<8x32xf32>
    %161 = arith.mulf %156, %141 : vector<8x32xf32>
    %162 = arith.mulf %154, %158 : vector<8x32xf32>
    %163 = arith.addf %161, %162 : vector<8x32xf32>
    %164 = math.tanh %163 : vector<8x32xf32>
    %165 = arith.mulf %160, %164 : vector<8x32xf32>
    %166 = vector.extract_strided_slice %9 {offsets = [56, 0], sizes = [8, 128], strides = [1, 1]} : vector<64x128xf32> to vector<8x128xf32>
    %cst_53 = arith.constant dense<0.000000e+00> : vector<8x128xf32>
    %167 = tpu.matmul %165, %1, %cst_53 {dimension_numbers = #tpu.dot_dimension_numbers<[1], [0], [0], [1], [0, 0, 1, 1], [], []>} : vector<8x32xf32>, vector<32x128xf32>, vector<8x128xf32> -> vector<8x128xf32>
    %168 = arith.addf %166, %167 : vector<8x128xf32>
    %cst_54 = arith.constant 0.000000e+00 : f32
    %169 = vector.broadcast %cst_54 : f32 to vector<8x128xf32>
    %170 = arith.subf %169, %168 : vector<8x128xf32>
    %171 = math.exp %170 : vector<8x128xf32>
    %cst_55 = arith.constant 1.000000e+00 : f32
    %172 = vector.broadcast %cst_55 : f32 to vector<8x128xf32>
    %173 = arith.addf %172, %171 : vector<8x128xf32>
    %174 = tpu.reciprocal %173 {approx = true} : vector<8x128xf32> -> vector<8x128xf32>
    %175 = math.tanh %168 : vector<8x128xf32>
    %176 = vector.extract_strided_slice %174 {offsets = [0, 0], sizes = [8, 32], strides = [1, 1]} : vector<8x128xf32> to vector<8x32xf32>
    %c96_i32_56 = arith.constant 96 : i32
    %177 = tpu.dynamic_rotate %174 by %c96_i32_56 dim 1 : vector<8x128xf32>, i32 -> vector<8x128xf32>
    %178 = vector.extract_strided_slice %177 {offsets = [0, 0], sizes = [8, 32], strides = [1, 1]} : vector<8x128xf32> to vector<8x32xf32>
    %c64_i32_57 = arith.constant 64 : i32
    %179 = tpu.dynamic_rotate %175 by %c64_i32_57 dim 1 : vector<8x128xf32>, i32 -> vector<8x128xf32>
    %180 = vector.extract_strided_slice %179 {offsets = [0, 0], sizes = [8, 32], strides = [1, 1]} : vector<8x128xf32> to vector<8x32xf32>
    %c32_i32_58 = arith.constant 32 : i32
    %181 = tpu.dynamic_rotate %174 by %c32_i32_58 dim 1 : vector<8x128xf32>, i32 -> vector<8x128xf32>
    %182 = vector.extract_strided_slice %181 {offsets = [0, 0], sizes = [8, 32], strides = [1, 1]} : vector<8x128xf32> to vector<8x32xf32>
    %183 = arith.mulf %178, %163 : vector<8x32xf32>
    %184 = arith.mulf %176, %180 : vector<8x32xf32>
    %185 = arith.addf %183, %184 : vector<8x32xf32>
    %186 = math.tanh %185 : vector<8x32xf32>
    %187 = arith.mulf %182, %186 : vector<8x32xf32>
    %cst_59 = arith.constant dense<0.000000e+00> : vector<8x128xf32>
    %188 = tpu.matmul %187, %3, %cst_59 {dimension_numbers = #tpu.dot_dimension_numbers<[1], [0], [0], [1], [0, 0, 1, 1], [], []>} : vector<8x32xf32>, vector<32x128xf32>, vector<8x128xf32> -> vector<8x128xf32>
    %189 = vector.broadcast %4 : vector<1x128xf32> to vector<8x128xf32>
    %190 = arith.addf %188, %189 : vector<8x128xf32>
    %cst_60 = arith.constant 0.000000e+00 : f32
    %191 = vector.broadcast %cst_60 : f32 to vector<8x128xf32>
    %192 = arith.subf %191, %190 : vector<8x128xf32>
    %193 = math.exp %192 : vector<8x128xf32>
    %cst_61 = arith.constant 1.000000e+00 : f32
    %194 = vector.broadcast %cst_61 : f32 to vector<8x128xf32>
    %195 = arith.addf %194, %193 : vector<8x128xf32>
    %196 = tpu.reciprocal %195 {approx = true} : vector<8x128xf32> -> vector<8x128xf32>
    %c0_62 = arith.constant 0 : index
    %c0_63 = arith.constant 0 : index
    %197 = vector.load %arg6[%c0_62, %c0_63] : memref<8x128xf32, #tpu.memory_space<vmem>>, vector<8x128xf32>
    tpu.vector_store %arg6[%c0_62, %c0_63], %196 {strides = array<i32>} : memref<8x128xf32, #tpu.memory_space<vmem>>, vector<8x128xf32>,
    return
  }
}

</mosaic_0001>

<bundles_post_ra>
// kernel: tpu_custom_call.1
= control target key start
LH: loop header
LB: loop body
LE: loop exit
PB: predicated region body
PF: predicated region fallthrough
CT: control target
= control target key end

     0   :  { %11 = vsyncpa [#allocation3], 0  ;;  %s1770_s0 = inlined_call_operand.hbm [shape: f32[8,8,16], index: 0, kind: input, shape index: {}]   ;;  %s1771_s1 = inlined_call_operand.hbm [shape: f32[16,128], index: 1, kind: input, shape index: {}]   ;;  %s1772_s2 = inlined_call_operand.hbm [shape: f32[32,128], index: 2, kind: input, shape index: {}]   ;;  %s1773_s3 = inlined_call_operand.vmem [shape: f32[1,128], index: 3, kind: input, shape index: {}]   ;;  %s1774_s4 = inlined_call_operand.hbm [shape: f32[32,128], index: 4, kind: input, shape index: {}]   ;;  %s1775_s5 = inlined_call_operand.vmem [shape: f32[1,128], index: 5, kind: input, shape index: {}]   ;;  %s1776_s6 = inlined_call_operand.hbm [shape: f32[8,128], index: 6, kind: output, shape index: {}]  }
   0x1   :  { %12 = vsyncpa [#allocation6], 0 }
   0x2   :  { %13 = vsyncpa [#allocation9], 0 }
   0x3   :  { %14 = vsyncpa [#allocation4], 0  ;;  %s1511_s21 = smov [#allocation5]   ;;  %s1512_s23 = smov [#allocation2]  }
   0x4   :  { %s32_s22 = sshll.u32 %s1511_s21, 4  ;;  %s20_s24 = sshll.u32 %s1512_s23, 4  ;;  %s33_s22 = int_to_ptr.vmem [resolvable:$true] %s32_s22  ;;  %s1559_s24 = int_to_ptr.vmem [resolvable:$true] %s20_s24 }
   0x5   :  { %s1393_s27 = scalar_lea.hbm %s1771_s1, 256 }
   0x6   :  { %p1394_p0 = scmp.ne.s32.totalorder %s1771_s1, %s1393_s27  ;;  %p1397_p1 = scmp.lt.u32.totalorder %s1393_s27, %s1771_s1 }
   0x8   :  { %p1399_p2 = pnand %p1397_p1, %p1394_p0 }
   0xa   :  { %1402 = shalt.err (!%p1399_p2)
}
   0xb   :  { %s1403_s8 = scalar_lea.vmem %s33_s22, 256  ;;  %p1408_p4 = scmp.lt.s32.totalorder %s33_s22, %s33_s22 }
   0xc   :  { %p1404_p3 = scmp.ne.s32.totalorder %s33_s22, %s1403_s8  ;;  %p1409_p5 = scmp.lt.s32.totalorder %s1403_s8, %s1403_s8 }
   0xe   :  { %p1410_p6 = por %p1409_p5, %p1408_p4 }
  0x10   :  { %p1411_p7 = pnand %p1410_p6, %p1404_p3 }
  0x12   :  { %1414 = shalt.err (!%p1411_p7)
}
  0x13   :  { %s1513_s9 = smov 128   ;;  %s1514_s10 = smov 8  }
  0x14   :  { %38 = dma.hbm_to_vmem [thread:$0]  %s1771_s1, 256, %s33_s22, [#allocation6], %s1513_s9, %s1513_s9, %s1514_s10  }
  0x15   :  { %s1415_s15 = scalar_lea.hbm %s1770_s0, 1024 }
  0x16   :  { %p1416_p8 = scmp.ne.s32.totalorder %s1770_s0, %s1415_s15  ;;  %p1419_p9 = scmp.lt.u32.totalorder %s1415_s15, %s1770_s0 }
  0x18   :  { %p1421_p10 = pnand %p1419_p9, %p1416_p8 }
  0x1a   :  { %1424 = shalt.err (!%p1421_p10)
}
  0x1b   :  { %s1425_s20 = scalar_lea.vmem %s1559_s24, 1024  ;;  %p1430_p12 = scmp.lt.s32.totalorder %s1559_s24, %s1559_s24 }
  0x1c   :  { %p1426_p11 = scmp.ne.s32.totalorder %s1559_s24, %s1425_s20  ;;  %p1431_p13 = scmp.lt.s32.totalorder %s1425_s20, %s1425_s20 }
  0x1e   :  { %p1432_p0 = por %p1431_p13, %p1430_p12 }
  0x20   :  { %p1433_p1 = pnand %p1432_p0, %p1426_p11 }
  0x22   :  { %1436 = shalt.err (!%p1433_p1)
}
  0x23   :  { %26 = dma.hbm_to_vmem [thread:$0]  %s1770_s0, 1024, %s1559_s24, [#allocation3], %s1513_s9, %s1513_s9, %s1514_s10  }
  0x24   :  { %s1515_s22 = smov [#allocation7]   ;;  %s1516_s25 = smov [#allocation8]  }
  0x25   :  { %s44_s23 = sshll.u32 %s1515_s22, 4  ;;  %s58_s26 = sshll.u32 %s1516_s25, 4  ;;  %s45_s23 = int_to_ptr.vmem [resolvable:$true] %s44_s23  ;;  %s1596_s26 = int_to_ptr.vmem [resolvable:$true] %s58_s26 }
  0x26   :  { %s1437_s29 = scalar_lea.hbm %s1772_s2, 512 }
  0x27   :  { %p1438_p2 = scmp.ne.s32.totalorder %s1772_s2, %s1437_s29  ;;  %p1441_p3 = scmp.lt.u32.totalorder %s1437_s29, %s1772_s2 }
  0x29   :  { %p1443_p4 = pnand %p1441_p3, %p1438_p2 }
  0x2b   :  { %1446 = shalt.err (!%p1443_p4)
}
  0x2c   :  { %s1447_s0 = scalar_lea.vmem %s45_s23, 512  ;;  %p1452_p6 = scmp.lt.s32.totalorder %s45_s23, %s45_s23 }
  0x2d   :  { %p1448_p5 = scmp.ne.s32.totalorder %s45_s23, %s1447_s0  ;;  %p1453_p7 = scmp.lt.s32.totalorder %s1447_s0, %s1447_s0 }
  0x2f   :  { %p1454_p8 = por %p1453_p7, %p1452_p6 }
  0x31   :  { %p1455_p9 = pnand %p1454_p8, %p1448_p5 }
  0x33   :  { %1458 = shalt.err (!%p1455_p9)
}
  0x34   :  { %50 = dma.hbm_to_vmem [thread:$0]  %s1772_s2, 512, %s45_s23, [#allocation6], %s1513_s9, %s1513_s9, %s1514_s10  }
  0x35   :  { %s1459_s15 = scalar_lea.hbm %s1774_s4, 512 }
  0x36   :  { %p1460_p10 = scmp.ne.s32.totalorder %s1774_s4, %s1459_s15  ;;  %p1463_p11 = scmp.lt.u32.totalorder %s1459_s15, %s1774_s4 }
  0x38   :  { %p1465_p12 = pnand %p1463_p11, %p1460_p10 }
  0x3a   :  { %1468 = shalt.err (!%p1465_p12)
}
  0x3b   :  { %s1469_s20 = scalar_lea.vmem %s1596_s26, 512  ;;  %p1474_p0 = scmp.lt.s32.totalorder %s1596_s26, %s1596_s26 }
  0x3c   :  { %p1470_p13 = scmp.ne.s32.totalorder %s1596_s26, %s1469_s20  ;;  %p1475_p1 = scmp.lt.s32.totalorder %s1469_s20, %s1469_s20 }
  0x3e   :  { %p1476_p2 = por %p1475_p1, %p1474_p0 }
  0x40   :  { %p1477_p3 = pnand %p1476_p2, %p1470_p13 }
  0x42   :  { %1480 = shalt.err (!%p1477_p3)
}
  0x43   :  { %64 = dma.hbm_to_vmem [thread:$0]  %s1774_s4, 512, %s1596_s26, [#allocation9], %s1513_s9, %s1513_s9, %s1514_s10  }
  0x44   :  { %1503 = dma.done.wait [#allocation3], 1024  }
  0x45   :  { %1504 = vsyncadd [#allocation3], 4294966272 }
  0x46   :  { %1505 = dma.done.wait [#allocation6], 768  }
  0x47   :  { %1506 = vsyncadd [#allocation6], 4294966528 }
  0x48   :  { %1507 = dma.done.wait [#allocation9], 512  }
  0x49   :  { %1508 = vsyncadd [#allocation9], 4294966784  ;;  %v1517_v0 = vmov 0.0|0.0   ;;  %vm1518_vm0 = vmmov 0   ;;  %v1519_v1 = vmov 0.0   ;;  %vm105_vm1 = vcmask 130048  }
  0x4a   :  { %1258 = vmatprep.subr.bf16.mxu1 %v1517_v0  ;;  %1163 = vmatprep.mubr.msk.f32.mxu1 %vm1518_vm0, %v1519_v1  ;;  %v79_v2 = vld [vmem:[#allocation5] sm:$0xff]  ;;  %v80_v3 = vld [vmem:[#allocation5 + $0x8] sm:$0xff]  ;;  %v81_v4 = vld [vmem:[#allocation7] sm:$0xff]  ;;  %s1520_s10 = smov 32   ;;  %s1522_s21 = smov 64   ;;  %vm235_vm2 = vcmask 261120  }
  0x4b   :  { %v1254_v5 = vpack.c.bf16 %v80_v3, %v79_v2  ;;  %v82_v6 = vld [vmem:[#allocation7 + $0x8] sm:$0xff]  ;;  %v91_v7 = vld [vmem:[#allocation2] sm:$0xff]  ;;  %v84_v10 = vld [vmem:[#allocation7 + $0x18] sm:$0xff]  ;;  %s1523_s25 = smov [#allocation10]  }
  0x4c   :  { %v1636_v8 = vpack.c.bf16 %v82_v6, %v81_v4  ;;  %1143 = vmatprep.mubr.msk.f32.mxu0 %vm105_vm1, %v91_v7  ;;  %v83_v9 = vld [vmem:[#allocation7 + $0x10] sm:$0xff]  ;;  %v92_v11 = vld [vmem:[#allocation2 + $0x8] sm:$0xff]  ;;  %v93_v43 = vld [vmem:[#allocation2 + $0x10] sm:$0xff]  ;;  %s1055_s26 = sshll.u32 %s1523_s25, 4  ;;  %s1056_s26 = int_to_ptr.vmem [resolvable:$true] %s1055_s26 }
  0x4d   :  { %1255 = vmatprep.subr.bf16.mxu0 %v1254_v5  ;;  %v1640_v12 = vpack.c.bf16 %v84_v10, %v83_v9  ;;  %v1661_v13 = vld [vmem:[%s1773_s3] ss:$0 sm:$0xff]  ;;  %s1521_s3 = smov 96   ;;  %v94_v44 = vld [vmem:[#allocation2 + $0x18] sm:$0xff]  ;;  %v96_v46 = vld [vmem:[#allocation2 + $0x28] sm:$0xff]  ;;  %s1481_s27 = scalar_lea.vmem %s1056_s26, 128 }
  0x4e   :  { %1260 = vmatpush3.bf16.msra.mxu1 %v1636_v8  ;;  %1257 = vmatpush3.bf16.msra.mxu0 %v1254_v5  ;;  %v95_v45 = vld [vmem:[#allocation2 + $0x20] sm:$0xff]  ;;  %v97_v47 = vld [vmem:[#allocation2 + $0x30] sm:$0xff]  ;;  %v98_v48 = vld [vmem:[#allocation2 + $0x38] sm:$0xff]  ;;  %p1482_p4 = scmp.ne.s32.totalorder %s1056_s26, %s1481_s27  ;;  %p1486_p5 = scmp.lt.s32.totalorder %s1056_s26, %s1056_s26 }
  0x4f   :  { %1261 = vmatprep.subr.bf16.mxu1 %v1517_v0  ;;  %1270 = vmatprep.subr.bf16.mxu0 %v1517_v0  ;;  %p1487_p6 = scmp.lt.s32.totalorder %s1481_s27, %s1481_s27 }
  0x51   :  { %1144 = vmatmul.mubr.msk.f32.vlgmr.msra.gmra.mrb[0].mxu0 %vm105_vm1, %v92_v11  ;;  %p1488_p7 = por %p1487_p6, %p1486_p5 }
  0x52   :  { %1263 = vmatpush3.bf16.msra.mxu1 %v1640_v12  ;;  %1272 = vmatpush3.bf16.msra.mxu0 %v1636_v8 }
  0x53   :  { %1264 = vmatprep.subr.bf16.mxu1 %v1517_v0  ;;  %1273 = vmatprep.subr.bf16.mxu0 %v1517_v0  ;;  %p1489_p8 = pnand %p1488_p7, %p1482_p4 }
  0x54   :  { %1146 = vmatprep.mubr.msk.f32.mxu0 %vm105_vm1, %v93_v43 }
  0x55   :  { %1164 = vmatmul.mubr.f32.vlgmr.msra.gmra.mrb[0].mxu1 %v1519_v1  ;;  %1147 = vmatmul.mubr.msk.f32.gmra.mrb[2].mxu0 %vm105_vm1, %v94_v44 }
  0x56   :  { %1266 = vmatpush3.bf16.msra.mxu1 %v1636_v8  ;;  %1174 = vmatprep.mubr.msk.f32.mxu1 %vm1518_vm0, %v1519_v1 }
  0x57   :  { %1267 = vmatprep.subr.bf16.mxu1 %v1517_v0  ;;  %1275 = vmatpush3.bf16.msra.mxu0 %v1640_v12 }
  0x58   :  { %1282 = vmatprep.subr.bf16.mxu0 %v1517_v0  ;;  %1149 = vmatprep.mubr.msk.f32.mxu0 %vm105_vm1, %v95_v45 }
  0x59   :  { %1150 = vmatmul.mubr.msk.f32.gmra.mrb[4].mxu0 %vm105_vm1, %v96_v46 }
  0x5a   :  { %1269 = vmatpush3.bf16.msra.mxu1 %v1640_v12  ;;  %1152 = vmatprep.mubr.msk.f32.mxu0 %vm105_vm1, %v97_v47 }
  0x5b   :  { %1276 = vmatprep.subr.bf16.mxu1 %v1517_v0 }
  0x5d   :  { %1153 = vmatmul.mubr.msk.f32.gmra.mrb[6].mxu0 %vm105_vm1, %v98_v48 }
  0x5e   :  { %1185 = vmatprep.mubr.msk.f32.mxu0 %vm1518_vm0, %v1519_v1 }
 0x124   :  { %v1145_v14 = vpop.f32.mrb[0].mxu0 }
 0x125   :  { %v196_v15 = vpop.f32.mrb[1].mxu0  ;;  %v202_v34 = vadd.f32 %v1145_v14, %v1661_v13 }
 0x126   :  { %v197_v16 = vadd.f32 %v1661_v13, %v196_v15 }
 0x128   :  { %v305_v17 = vpop.f32.mrb[0].mxu1  ;;  %v1148_v58 = vpop.f32.mrb[2].mxu0 }
 0x129   :  { %v309_v18 = vadd.f32 %v305_v17, %v197_v16  ;;  %v1165_v19 = vpop.f32.mrb[1].mxu1  ;;  %v206_v59 = vpop.f32.mrb[3].mxu0 }
 0x12a   :  { %v207_v2 = vadd.f32 %v1661_v13, %v206_v59 }
 0x12b   :  { %v310_v20 = vsub.f32 0.0, %v309_v18 }
 0x12c   :  { %v1693_v60 = vpop.f32.mrb[4].mxu0 }
 0x12d   :  { %v311_v21 = vmul.f32 1.442695, %v310_v20  ;;  %v1695_v61 = vpop.f32.mrb[5].mxu0  ;;  %v222_v59 = vadd.f32 %v1693_v60, %v1661_v13 }
 0x12f   :  { %1325 = vpow2.f32 %v311_v21 }
 0x130   :  { %v1697_v62 = vpop.f32.mrb[6].mxu0 }
 0x131   :  { %v1699_v63 = vpop.f32.mrb[7].mxu0 }
 0x139   :  { %v1326_v22 = vpop.eup %1325 }
 0x13a   :  { %v313_v23 = vadd.f32 1.0, %v1326_v22 }
 0x13c   :  { %1327 = vrcp.f32 %v313_v23  ;;  %v212_v23 = vadd.f32 %v1148_v58, %v1661_v13 }
 0x13d   :  { %1329 = vtanh.f32 %v309_v18 }
 0x146   :  { %v1328_v24 = vpop.eup %1327 }
 0x147   :  { %320 = vrot.lane.b32.xlu1 %v1328_v24, %s1520_s10  ;;  %316 = vrot.lane.b32.xlu0 %v1328_v24, %s1521_s3  ;;  %v1330_v25 = vpop.eup %1329 }
 0x14b   :  { %318 = vrot.lane.b32.xlu0 %v1330_v25, %s1522_s21 }
 0x1b9   :  { %v317_v26 = vpop.permute.xlu0 %316  ;;  %v321_v32 = vpop.permute.xlu1 %320 }
 0x1ba   :  { %v322_v28 = vmul.f32 0.0, %v317_v26 }
 0x1bd   :  { %v319_v27 = vpop.permute.xlu0 %318 }
 0x1be   :  { %v323_v29 = vmul.f32 %v1328_v24, %v319_v27 }
 0x1c0   :  { %v324_v30 = vadd.f32 %v323_v29, %v322_v28 }
 0x1c2   :  { %1331 = vtanh.f32 %v324_v30 }
 0x1cc   :  { %v1332_v31 = vpop.eup %1331 }
 0x1cd   :  { %v326_v33 = vmul.f32 %v1332_v31, %v321_v32 }
 0x1cf   :  { %1175 = vmatmul.mubr.msk.f32.vlgmr.msra.gmra.mrb[2].mxu1 %vm235_vm2, %v326_v33 }
 0x1d0   :  { %1278 = vmatpush3.bf16.msra.mxu1 %v1636_v8  ;;  %1196 = vmatprep.mubr.msk.f32.mxu1 %vm1518_vm0, %v1519_v1 }
 0x1d1   :  { %1279 = vmatprep.subr.bf16.mxu1 %v1517_v0 }
 0x1d4   :  { %1281 = vmatpush3.bf16.msra.mxu1 %v1640_v12 }
 0x1d5   :  { %1288 = vmatprep.subr.bf16.mxu1 %v1517_v0 }
 0x2a2   :  { %v396_v35 = vpop.f32.mrb[2].mxu1 }
 0x2a3   :  { %v400_v36 = vadd.f32 %v396_v35, %v202_v34  ;;  %v1176_v37 = vpop.f32.mrb[3].mxu1 }
 0x2a5   :  { %v401_v38 = vsub.f32 0.0, %v400_v36  ;;  %1333 = vtanh.f32 %v400_v36 }
 0x2a7   :  { %v402_v39 = vmul.f32 1.442695, %v401_v38 }
 0x2a9   :  { %1335 = vpow2.f32 %v402_v39 }
 0x2af   :  { %v1334_v40 = vpop.eup %1333 }
 0x2b0   :  { %409 = vrot.lane.b32.xlu0 %v1334_v40, %s1522_s21 }
 0x2b3   :  { %v1336_v41 = vpop.eup %1335 }
 0x2b4   :  { %v404_v42 = vadd.f32 1.0, %v1336_v41  ;;  %v217_v41 = vadd.f32 %v1661_v13, %v1695_v61 }
 0x2b6   :  { %1337 = vrcp.f32 %v404_v42 }
 0x2c0   :  { %v1338_v49 = vpop.eup %1337 }
 0x2c1   :  { %407 = vrot.lane.b32.xlu1 %v1338_v49, %s1521_s3 }
 0x2c5   :  { %411 = vrot.lane.b32.xlu1 %v1338_v49, %s1520_s10 }
 0x322   :  { %v410_v50 = vpop.permute.xlu0 %409 }
 0x323   :  { %v414_v52 = vmul.f32 %v1338_v49, %v410_v50 }
 0x333   :  { %v408_v51 = vpop.permute.xlu1 %407 }
 0x334   :  { %v413_v53 = vmul.f32 %v408_v51, %v324_v30 }
 0x336   :  { %v415_v54 = vadd.f32 %v414_v52, %v413_v53 }
 0x337   :  { %v412_v56 = vpop.permute.xlu1 %411 }
 0x338   :  { %1339 = vtanh.f32 %v415_v54 }
 0x342   :  { %v1340_v55 = vpop.eup %1339 }
 0x343   :  { %v417_v57 = vmul.f32 %v1340_v55, %v412_v56 }
 0x345   :  { %1186 = vmatmul.mubr.msk.f32.vlgmr.msra.gmra.mrb[8].mxu0 %vm235_vm2, %v417_v57 }
 0x346   :  { %1284 = vmatpush3.bf16.msra.mxu0 %v1636_v8  ;;  %1207 = vmatprep.mubr.msk.f32.mxu0 %vm1518_vm0, %v1519_v1 }
 0x347   :  { %1285 = vmatprep.subr.bf16.mxu0 %v1517_v0 }
 0x34a   :  { %1287 = vmatpush3.bf16.msra.mxu0 %v1640_v12 }
 0x34b   :  { %1294 = vmatprep.subr.bf16.mxu0 %v1517_v0 }
 0x418   :  { %v487_v3 = vpop.f32.mrb[8].mxu0 }
 0x419   :  { %v491_v4 = vadd.f32 %v487_v3, %v207_v2  ;;  %v1187_v5 = vpop.f32.mrb[9].mxu0 }
 0x41b   :  { %v492_v6 = vsub.f32 0.0, %v491_v4  ;;  %1341 = vtanh.f32 %v491_v4 }
 0x41d   :  { %v493_v7 = vmul.f32 1.442695, %v492_v6 }
 0x41f   :  { %1343 = vpow2.f32 %v493_v7 }
 0x425   :  { %v1342_v9 = vpop.eup %1341 }
 0x426   :  { %500 = vrot.lane.b32.xlu1 %v1342_v9, %s1522_s21 }
 0x429   :  { %v1344_v10 = vpop.eup %1343 }
 0x42a   :  { %v495_v11 = vadd.f32 1.0, %v1344_v10 }
 0x42c   :  { %1345 = vrcp.f32 %v495_v11 }
 0x436   :  { %v1346_v14 = vpop.eup %1345 }
 0x437   :  { %498 = vrot.lane.b32.xlu0 %v1346_v14, %s1521_s3 }
 0x43b   :  { %502 = vrot.lane.b32.xlu0 %v1346_v14, %s1520_s10 }
 0x498   :  { %v501_v15 = vpop.permute.xlu1 %500 }
 0x499   :  { %v505_v17 = vmul.f32 %v1346_v14, %v501_v15 }
 0x4a9   :  { %v499_v16 = vpop.permute.xlu0 %498 }
 0x4aa   :  { %v504_v18 = vmul.f32 %v499_v16, %v415_v54 }
 0x4ac   :  { %v506_v19 = vadd.f32 %v505_v17, %v504_v18  ;;  %v227_v18 = vadd.f32 %v1661_v13, %v1699_v63 }
 0x4ad   :  { %v503_v21 = vpop.permute.xlu0 %502 }
 0x4ae   :  { %1347 = vtanh.f32 %v506_v19 }
 0x4b8   :  { %v1348_v20 = vpop.eup %1347 }
 0x4b9   :  { %v508_v22 = vmul.f32 %v1348_v20, %v503_v21 }
 0x4bb   :  { %1197 = vmatmul.mubr.msk.f32.vlgmr.msra.gmra.mrb[4].mxu1 %vm235_vm2, %v508_v22 }
 0x4bc   :  { %1290 = vmatpush3.bf16.msra.mxu1 %v1636_v8  ;;  %1218 = vmatprep.mubr.msk.f32.mxu1 %vm1518_vm0, %v1519_v1 }
 0x4bd   :  { %1291 = vmatprep.subr.bf16.mxu1 %v1517_v0 }
 0x4c0   :  { %1293 = vmatpush3.bf16.msra.mxu1 %v1640_v12 }
 0x4c1   :  { %1300 = vmatprep.subr.bf16.mxu1 %v1517_v0 }
 0x58e   :  { %v578_v24 = vpop.f32.mrb[4].mxu1 }
 0x58f   :  { %v582_v25 = vadd.f32 %v578_v24, %v212_v23  ;;  %v1198_v26 = vpop.f32.mrb[5].mxu1 }
 0x591   :  { %v583_v27 = vsub.f32 0.0, %v582_v25  ;;  %1349 = vtanh.f32 %v582_v25 }
 0x593   :  { %v584_v28 = vmul.f32 1.442695, %v583_v27 }
 0x595   :  { %1351 = vpow2.f32 %v584_v28 }
 0x59b   :  { %v1350_v29 = vpop.eup %1349 }
 0x59c   :  { %591 = vrot.lane.b32.xlu0 %v1350_v29, %s1522_s21 }
 0x59f   :  { %v1352_v30 = vpop.eup %1351 }
 0x5a0   :  { %v586_v31 = vadd.f32 1.0, %v1352_v30 }
 0x5a2   :  { %1353 = vrcp.f32 %v586_v31 }
 0x5ac   :  { %v1354_v32 = vpop.eup %1353 }
 0x5ad   :  { %589 = vrot.lane.b32.xlu1 %v1354_v32, %s1521_s3 }
 0x5b1   :  { %593 = vrot.lane.b32.xlu1 %v1354_v32, %s1520_s10 }
 0x60e   :  { %v592_v33 = vpop.permute.xlu0 %591 }
 0x60f   :  { %v596_v35 = vmul.f32 %v1354_v32, %v592_v33 }
 0x61f   :  { %v590_v34 = vpop.permute.xlu1 %589 }
 0x620   :  { %v595_v36 = vmul.f32 %v590_v34, %v506_v19  ;;  %v232_v34 = vadd.f32 %v1697_v62, %v1661_v13  ;;  %v88_v13 = vld [vmem:[#allocation8 + $0x10] sm:$0xff]  ;;  %v89_v62 = vld [vmem:[#allocation8 + $0x18] sm:$0xff] }
 0x622   :  { %v597_v37 = vadd.f32 %v596_v35, %v595_v36 }
 0x623   :  { %v594_v39 = vpop.permute.xlu1 %593 }
 0x624   :  { %1355 = vtanh.f32 %v597_v37 }
 0x62e   :  { %v1356_v38 = vpop.eup %1355 }
 0x62f   :  { %v599_v40 = vmul.f32 %v1356_v38, %v594_v39 }
 0x631   :  { %1208 = vmatmul.mubr.msk.f32.vlgmr.msra.gmra.mrb[10].mxu0 %vm235_vm2, %v599_v40 }
 0x632   :  { %1296 = vmatpush3.bf16.msra.mxu0 %v1636_v8  ;;  %1229 = vmatprep.mubr.msk.f32.mxu0 %vm1518_vm0, %v1519_v1 }
 0x633   :  { %1297 = vmatprep.subr.bf16.mxu0 %v1517_v0 }
 0x636   :  { %1299 = vmatpush3.bf16.msra.mxu0 %v1640_v12 }
 0x637   :  { %1306 = vmatprep.subr.bf16.mxu0 %v1517_v0 }
 0x704   :  { %v669_v42 = vpop.f32.mrb[10].mxu0 }
 0x705   :  { %v673_v43 = vadd.f32 %v669_v42, %v217_v41  ;;  %v1209_v44 = vpop.f32.mrb[11].mxu0 }
 0x706   :  { %v87_v44 = vld [vmem:[#allocation8 + $0x8] sm:$0xff] }
 0x707   :  { %v674_v45 = vsub.f32 0.0, %v673_v43  ;;  %1357 = vtanh.f32 %v673_v43  ;;  %v86_v43 = vld [vmem:[#allocation8] sm:$0xff] }
 0x709   :  { %v675_v46 = vmul.f32 1.442695, %v674_v45  ;;  %v1307_v45 = vpack.c.bf16 %v87_v44, %v86_v43 }
 0x70b   :  { %1359 = vpow2.f32 %v675_v46 }
 0x711   :  { %v1358_v47 = vpop.eup %1357 }
 0x712   :  { %682 = vrot.lane.b32.xlu1 %v1358_v47, %s1522_s21  ;;  %v1310_v47 = vpack.c.bf16 %v89_v62, %v88_v13 }
 0x715   :  { %v1360_v48 = vpop.eup %1359 }
 0x716   :  { %v677_v49 = vadd.f32 1.0, %v1360_v48 }
 0x718   :  { %1361 = vrcp.f32 %v677_v49 }
 0x722   :  { %v1362_v50 = vpop.eup %1361 }
 0x723   :  { %680 = vrot.lane.b32.xlu0 %v1362_v50, %s1521_s3 }
 0x727   :  { %684 = vrot.lane.b32.xlu0 %v1362_v50, %s1520_s10 }
 0x784   :  { %v683_v51 = vpop.permute.xlu1 %682 }
 0x785   :  { %v687_v53 = vmul.f32 %v1362_v50, %v683_v51 }
 0x795   :  { %v681_v52 = vpop.permute.xlu0 %680 }
 0x796   :  { %v686_v54 = vmul.f32 %v681_v52, %v597_v37 }
 0x798   :  { %v688_v55 = vadd.f32 %v687_v53, %v686_v54 }
 0x799   :  { %v685_v57 = vpop.permute.xlu0 %684 }
 0x79a   :  { %1363 = vtanh.f32 %v688_v55 }
 0x7a4   :  { %v1364_v56 = vpop.eup %1363 }
 0x7a5   :  { %v690_v58 = vmul.f32 %v1364_v56, %v685_v57 }
 0x7a7   :  { %1219 = vmatmul.mubr.msk.f32.vlgmr.msra.gmra.mrb[6].mxu1 %vm235_vm2, %v690_v58 }
 0x7a8   :  { %1302 = vmatpush3.bf16.msra.mxu1 %v1636_v8  ;;  %1240 = vmatprep.mubr.msk.f32.mxu1 %vm1518_vm0, %v1519_v1 }
 0x7a9   :  { %1303 = vmatprep.subr.bf16.mxu1 %v1517_v0 }
 0x7ac   :  { %1305 = vmatpush3.bf16.msra.mxu1 %v1640_v12 }
 0x87a   :  { %v760_v61 = vpop.f32.mrb[6].mxu1 }
 0x87b   :  { %v764_v2 = vadd.f32 %v760_v61, %v222_v59  ;;  %v1220_v3 = vpop.f32.mrb[7].mxu1 }
 0x87d   :  { %v765_v4 = vsub.f32 0.0, %v764_v2  ;;  %1365 = vtanh.f32 %v764_v2 }
 0x87f   :  { %v766_v5 = vmul.f32 1.442695, %v765_v4 }
 0x881   :  { %1367 = vpow2.f32 %v766_v5 }
 0x887   :  { %v1366_v6 = vpop.eup %1365 }
 0x888   :  { %773 = vrot.lane.b32.xlu0 %v1366_v6, %s1522_s21 }
 0x88b   :  { %v1368_v8 = vpop.eup %1367 }
 0x88c   :  { %v768_v7 = vadd.f32 1.0, %v1368_v8 }
 0x88e   :  { %1369 = vrcp.f32 %v768_v7 }
 0x898   :  { %v1370_v9 = vpop.eup %1369 }
 0x899   :  { %771 = vrot.lane.b32.xlu1 %v1370_v9, %s1521_s3 }
 0x89d   :  { %775 = vrot.lane.b32.xlu1 %v1370_v9, %s1520_s10 }
 0x8fa   :  { %v774_v12 = vpop.permute.xlu0 %773 }
 0x8fb   :  { %v778_v10 = vmul.f32 %v1370_v9, %v774_v12 }
 0x90b   :  { %v772_v60 = vpop.permute.xlu1 %771 }
 0x90c   :  { %v777_v11 = vmul.f32 %v772_v60, %v688_v55 }
 0x90e   :  { %v779_v14 = vadd.f32 %v778_v10, %v777_v11 }
 0x90f   :  { %v776_v16 = vpop.permute.xlu1 %775 }
 0x910   :  { %1371 = vtanh.f32 %v779_v14 }
 0x91a   :  { %v1372_v15 = vpop.eup %1371 }
 0x91b   :  { %v781_v17 = vmul.f32 %v1372_v15, %v776_v16 }
 0x91d   :  { %1230 = vmatmul.mubr.msk.f32.vlgmr.msra.gmra.mrb[12].mxu0 %vm235_vm2, %v781_v17 }
 0x91e   :  { %1251 = vmatprep.mubr.msk.f32.mxu0 %vm1518_vm0, %v1519_v1  ;;  %1308 = vmatpush3.bf16.msra.mxu0 %v1307_v45 }
 0x91f   :  { %1309 = vmatprep.subr.bf16.mxu0 %v1517_v0  ;;  %v1082_v0 = vld [vmem:[%s1775_s5] ss:$0 sm:$0xff] }
 0x922   :  { %1311 = vmatpush3.bf16.msra.mxu0 %v1310_v47 }
 0x9f0   :  { %v851_v19 = vpop.f32.mrb[12].mxu0 }
 0x9f1   :  { %v855_v20 = vadd.f32 %v851_v19, %v227_v18  ;;  %v1231_v21 = vpop.f32.mrb[13].mxu0 }
 0x9f3   :  { %v856_v22 = vsub.f32 0.0, %v855_v20  ;;  %1373 = vtanh.f32 %v855_v20 }
 0x9f5   :  { %v857_v23 = vmul.f32 1.442695, %v856_v22 }
 0x9f7   :  { %1375 = vpow2.f32 %v857_v23 }
 0x9fd   :  { %v1374_v24 = vpop.eup %1373 }
 0x9fe   :  { %864 = vrot.lane.b32.xlu1 %v1374_v24, %s1522_s21 }
 0xa01   :  { %v1376_v25 = vpop.eup %1375 }
 0xa02   :  { %v859_v26 = vadd.f32 1.0, %v1376_v25 }
 0xa04   :  { %1377 = vrcp.f32 %v859_v26 }
 0xa0e   :  { %v1378_v27 = vpop.eup %1377 }
 0xa0f   :  { %862 = vrot.lane.b32.xlu0 %v1378_v27, %s1521_s3 }
 0xa13   :  { %866 = vrot.lane.b32.xlu0 %v1378_v27, %s1520_s10 }
 0xa70   :  { %v865_v1 = vpop.permute.xlu1 %864 }
 0xa71   :  { %v869_v28 = vmul.f32 %v1378_v27, %v865_v1 }
 0xa81   :  { %v863_v63 = vpop.permute.xlu0 %862 }
 0xa82   :  { %v868_v29 = vmul.f32 %v863_v63, %v779_v14 }
 0xa84   :  { %v870_v30 = vadd.f32 %v869_v28, %v868_v29 }
 0xa85   :  { %v867_v32 = vpop.permute.xlu0 %866 }
 0xa86   :  { %1379 = vtanh.f32 %v870_v30 }
 0xa90   :  { %v1380_v31 = vpop.eup %1379 }
 0xa91   :  { %v872_v33 = vmul.f32 %v1380_v31, %v867_v32 }
 0xa93   :  { %1241 = vmatmul.mubr.msk.f32.vlgmr.msra.gmra.mrb[8].mxu1 %vm235_vm2, %v872_v33 }
 0xb66   :  { %v942_v35 = vpop.f32.mrb[8].mxu1 }
 0xb67   :  { %v946_v36 = vadd.f32 %v942_v35, %v232_v34  ;;  %v1242_v37 = vpop.f32.mrb[9].mxu1 }
 0xb69   :  { %v947_v38 = vsub.f32 0.0, %v946_v36  ;;  %1381 = vtanh.f32 %v946_v36 }
 0xb6b   :  { %v948_v39 = vmul.f32 1.442695, %v947_v38 }
 0xb6d   :  { %1383 = vpow2.f32 %v948_v39 }
 0xb73   :  { %v1382_v40 = vpop.eup %1381 }
 0xb74   :  { %955 = vrot.lane.b32.xlu0 %v1382_v40, %s1522_s21 }
 0xb77   :  { %v1384_v41 = vpop.eup %1383 }
 0xb78   :  { %v950_v42 = vadd.f32 1.0, %v1384_v41 }
 0xb7a   :  { %1385 = vrcp.f32 %v950_v42 }
 0xb84   :  { %v1386_v46 = vpop.eup %1385 }
 0xb85   :  { %953 = vrot.lane.b32.xlu1 %v1386_v46, %s1521_s3 }
 0xb89   :  { %957 = vrot.lane.b32.xlu1 %v1386_v46, %s1520_s10 }
 0xbe6   :  { %v956_v48 = vpop.permute.xlu0 %955 }
 0xbe7   :  { %v960_v50 = vmul.f32 %v1386_v46, %v956_v48 }
 0xbf7   :  { %v954_v49 = vpop.permute.xlu1 %953 }
 0xbf8   :  { %v959_v51 = vmul.f32 %v954_v49, %v870_v30 }
 0xbfa   :  { %v961_v52 = vadd.f32 %v960_v50, %v959_v51 }
 0xbfb   :  { %v958_v54 = vpop.permute.xlu1 %957 }
 0xbfc   :  { %1387 = vtanh.f32 %v961_v52 }
 0xc06   :  { %v1388_v53 = vpop.eup %1387 }
 0xc07   :  { %v963_v55 = vmul.f32 %v1388_v53, %v958_v54 }
 0xc09   :  { %1252 = vmatmul.mubr.msk.f32.vlgmr.msra.gmra.mrb[14].mxu0 %vm235_vm2, %v963_v55 }
 0xcdc   :  { %v1039_v56 = vpop.f32.mrb[14].mxu0 }
 0xcdd   :  { %v1040_v57 = vadd.f32 %v1082_v0, %v1039_v56  ;;  %v1253_v58 = vpop.f32.mrb[15].mxu0 }
 0xcdf   :  { %v1043_v59 = vsub.f32 0.0, %v1040_v57 }
 0xce1   :  { %v1044_v61 = vmul.f32 1.442695, %v1043_v59 }
 0xce3   :  { %1389 = vpow2.f32 %v1044_v61 }
 0xced   :  { %v1390_v2 = vpop.eup %1389 }
 0xcee   :  { %v1046_v3 = vadd.f32 1.0, %v1390_v2 }
 0xcf0   :  { %1391 = vrcp.f32 %v1046_v3 }
 0xcfa   :  { %v1392_v4 = vpop.eup %1391 }
 0xcfb   :  { %1048 = vst [vmem:[#allocation10] sm:$0xff] %v1392_v4 }
 0xcfc   :  { %1492 = shalt.err (!%p1489_p8)
}
 0xcfd   :  { %s1493_s29 = scalar_lea.hbm %s1776_s6, 128 }
 0xcfe   :  { %p1494_p9 = scmp.ne.s32.totalorder %s1776_s6, %s1493_s29  ;;  %p1497_p10 = scmp.lt.u32.totalorder %s1493_s29, %s1776_s6 }
 0xd00   :  { %p1499_p11 = pnand %p1497_p10, %p1494_p9 }
 0xd02   :  { %1502 = shalt.err (!%p1499_p11)
}
 0xd03   :  { %1058 = dma.vmem_to_hbm [thread:$0]  %s1056_s26, 128, %s1776_s6, [#allocation4]  }
 0xd04   :  { %1509 = dma.done.wait [#allocation4], 128  }
 0xd05   :  { %1510 = vsyncadd [#allocation4], 4294967168 }
 0xd06   :  { %1062 = vsyncpa [#allocation3], 1 }
 0xd07   :  { %1063 = vsyncpa [#allocation6], 1 }
 0xd08   :  { %1064 = vsyncpa [#allocation9], 1 }
 0xd09   :  { %1065 = vsyncpa [#allocation4], 1 }

</bundles_post_ra>
